<compile_context>
chip_gen: v7x
topology: tpu7x:2x2x1
jax: 0.10.0
libtpu: 0.0.40
codegen_flags: <defaults>
</compile_context>

<pallas_src>
import functools

import jax
import jax.numpy as jnp
from jax.experimental import pallas as pl
from jax.experimental.pallas import tpu as pltpu

P_DROP = 0.2
KEEP_SCALE = 1.0 / (1.0 - P_DROP)
# keep element iff bits >= P_DROP * 2^32  (P(keep) = 1 - P_DROP)
DROP_THRESHOLD = int(P_DROP * (1 << 32)) & 0xFFFFFFFF

IN_FEATURES = 28 * 28          # 784
HIDDEN = 128
OUT_FEATURES = 10
OUT_PAD = 128                  # lane-dense output width


def _round_up(n, m):
    return ((n + m - 1) // m) * m


def _mlp_kernel(x_ref, w1_ref, b1_ref, w2_ref, b2_ref, rb_ref, o_ref):
    """One batch tile: fc1 -> relu -> dropout(0.2) -> fc2 (lane-padded output)."""
    x = x_ref[...]                                                     # (TM, 784) f32

    # fc1 + relu
    h = jnp.dot(x, w1_ref[...], preferred_element_type=jnp.float32)   # (TM, 128)
    h = jnp.maximum(h + b1_ref[...], 0.0)

    # dropout(p=0.2): integer threshold compare on precomputed uint32 bits,
    # inverted-dropout scaling (training-mode semantics).
    # TODO(synk): mask bits come from jax.random (Threefry), so the exact mask
    # differs from torch's CPU RNG stream (distributionally equivalent).
    keep = rb_ref[...] >= jnp.uint32(DROP_THRESHOLD)                   # (TM, 128) bool
    h = jnp.where(keep, h * KEEP_SCALE, 0.0)

    # fc2 (output padded to 128 lanes; extra columns are exactly zero)
    out = jnp.dot(h, w2_ref[...], preferred_element_type=jnp.float32)  # (TM, 128)
    o_ref[...] = (out + b2_ref[...]).astype(o_ref.dtype)


@functools.partial(jax.jit)
def basic_classif_forward(x, w1, b1, w2, b2, dropout_key):
    """x: any shape with 28*28 trailing elements per row; returns (B, 10) float32."""
    xf = x.reshape(-1, IN_FEATURES).astype(jnp.float32)                # x.view(-1, 784)
    B = xf.shape[0]

    # Batch tiling: TM rows per grid step (multiple of 8 sublanes).
    TM = 256 if B >= 256 else _round_up(max(B, 1), 8)
    B_pad = _round_up(B, TM)
    if B_pad != B:
        xf = jnp.pad(xf, ((0, B_pad - B), (0, 0)))

    # Weights pre-transposed to (in, out); fc2 padded to lane-dense 128 outputs.
    w1t = w1.T.astype(jnp.float32)                                     # (784, 128)
    w2t = jnp.pad(w2.T.astype(jnp.float32),
                  ((0, 0), (0, OUT_PAD - OUT_FEATURES)))               # (128, 128)
    b1r = b1.reshape(1, HIDDEN).astype(jnp.float32)                    # (1, 128)
    b2r = jnp.pad(b2.reshape(1, OUT_FEATURES).astype(jnp.float32),
                  ((0, 0), (0, OUT_PAD - OUT_FEATURES)))               # (1, 128)

    # Random bits for the dropout mask, one uint32 per hidden activation.
    rbits = jax.random.bits(dropout_key, (B_pad, HIDDEN), dtype=jnp.uint32)

    grid = (B_pad // TM,)
    out = pl.pallas_call(
        _mlp_kernel,
        out_shape=jax.ShapeDtypeStruct((B_pad, OUT_PAD), jnp.float32),
        grid=grid,
        in_specs=[
            pl.BlockSpec((TM, IN_FEATURES), lambda i: (i, 0)),   # x tile (streamed)
            pl.BlockSpec((IN_FEATURES, HIDDEN), lambda i: (0, 0)),  # w1t (resident)
            pl.BlockSpec((1, HIDDEN), lambda i: (0, 0)),         # b1  (resident)
            pl.BlockSpec((HIDDEN, OUT_PAD), lambda i: (0, 0)),   # w2t (resident)
            pl.BlockSpec((1, OUT_PAD), lambda i: (0, 0)),        # b2  (resident)
            pl.BlockSpec((TM, HIDDEN), lambda i: (i, 0)),        # dropout bits (streamed)
        ],
        out_specs=pl.BlockSpec((TM, OUT_PAD), lambda i: (i, 0)),
        compiler_params=pltpu.CompilerParams(
            dimension_semantics=("parallel",)),
    )(xf, w1t, b1r, w2t, b2r, rbits)

    return out[:B, :OUT_FEATURES]


def init_params(key):
    """Deterministic init matching nn.Linear shapes: W ~ U(-1/sqrt(fan_in), +)."""
    k1, k2, k3, k4 = jax.random.split(key, 4)
    lim1 = 1.0 / jnp.sqrt(float(IN_FEATURES))
    lim2 = 1.0 / jnp.sqrt(float(HIDDEN))
    w1 = jax.random.uniform(k1, (HIDDEN, IN_FEATURES), jnp.float32, -lim1, lim1)
    b1 = jax.random.uniform(k2, (HIDDEN,), jnp.float32, -lim1, lim1)
    w2 = jax.random.uniform(k3, (OUT_FEATURES, HIDDEN), jnp.float32, -lim2, lim2)
    b2 = jax.random.uniform(k4, (OUT_FEATURES,), jnp.float32, -lim2, lim2)
    return w1, b1, w2, b2


if __name__ == "__main__":
    key = jax.random.PRNGKey(0)
    kx, kp, kd = jax.random.split(key, 3)
    # small MNIST-like batch: (B=2, C=1, H=28, W=28) -> view(-1, 784)
    x = jax.random.normal(kx, (2, 1, 28, 28), jnp.float32)
    w1, b1, w2, b2 = init_params(kp)

    out = basic_classif_forward(x, w1, b1, w2, b2, kd)
    jax.block_until_ready(out)
    assert out.shape == (2, 10) and out.dtype == jnp.float32
    assert bool(jnp.all(jnp.isfinite(out)))
    print("KERNEL_OK")
</pallas_src>

<mosaic_0001>
module attributes {stable_mosaic.version = 11 : i64} {
  func.func @_mlp_kernel(%arg0: i32, %arg1: memref<8x784xf32, #tpu.memory_space<vmem>>, %arg2: memref<784x128xf32, #tpu.memory_space<vmem>>, %arg3: memref<1x128xf32, #tpu.memory_space<vmem>>, %arg4: memref<128x128xf32, #tpu.memory_space<vmem>>, %arg5: memref<1x128xf32, #tpu.memory_space<vmem>>, %arg6: memref<8x128xi32, #tpu.memory_space<vmem>>, %arg7: memref<8x128xf32, #tpu.memory_space<vmem>>) attributes {dimension_semantics = [#tpu.dimension_semantics<parallel>], iteration_bounds = array<i64: 1>, scalar_prefetch = 0 : i64, scratch_operands = 0 : i64, tpu.core_type = #tpu.core_type<tc>, window_params = [{transform_indices = @transform_0, window_bounds = array<i64: 8, 784>}, {pipeline_mode = #tpu.pipeline_mode<synchronous>, transform_indices = @transform_1, window_bounds = array<i64: 784, 128>}, {pipeline_mode = #tpu.pipeline_mode<synchronous>, transform_indices = @transform_2, window_bounds = array<i64: 1, 128>}, {pipeline_mode = #tpu.pipeline_mode<synchronous>, transform_indices = @transform_3, window_bounds = array<i64: 128, 128>}, {pipeline_mode = #tpu.pipeline_mode<synchronous>, transform_indices = @transform_4, window_bounds = array<i64: 1, 128>}, {transform_indices = @transform_5, window_bounds = array<i64: 8, 128>}, {transform_indices = @transform_6, window_bounds = array<i64: 8, 128>}]} {
    %c0 = arith.constant 0 : index
    %c0_0 = arith.constant 0 : index
    %0 = vector.load %arg1[%c0, %c0_0] : memref<8x784xf32, #tpu.memory_space<vmem>>, vector<8x784xf32>
    %c0_1 = arith.constant 0 : index
    %c0_2 = arith.constant 0 : index
    %1 = vector.load %arg2[%c0_1, %c0_2] : memref<784x128xf32, #tpu.memory_space<vmem>>, vector<784x128xf32>
    %cst = arith.constant dense<0.000000e+00> : vector<8x128xf32>
    %2 = tpu.matmul %0, %1, %cst {dimension_numbers = #tpu.dot_dimension_numbers<[1], [0], [0], [1], [0, 0, 1, 1], [], []>} : vector<8x784xf32>, vector<784x128xf32>, vector<8x128xf32> -> vector<8x128xf32>
    %c0_3 = arith.constant 0 : index
    %c0_4 = arith.constant 0 : index
    %3 = vector.load %arg3[%c0_3, %c0_4] : memref<1x128xf32, #tpu.memory_space<vmem>>, vector<1x128xf32>
    %4 = vector.broadcast %3 : vector<1x128xf32> to vector<8x128xf32>
    %5 = arith.addf %2, %4 : vector<8x128xf32>
    %cst_5 = arith.constant 0.000000e+00 : f32
    %6 = vector.broadcast %cst_5 : f32 to vector<8x128xf32>
    %7 = arith.maximumf %5, %6 : vector<8x128xf32>
    %c0_6 = arith.constant 0 : index
    %c0_7 = arith.constant 0 : index
    %8 = vector.load %arg6[%c0_6, %c0_7] : memref<8x128xi32, #tpu.memory_space<vmem>>, vector<8x128xi32>
    %c858993459_i32 = arith.constant 858993459 : i32
    %9 = vector.broadcast %c858993459_i32 : i32 to vector<8x128xi32>
    %10 = arith.cmpi uge, %8, %9 : vector<8x128xi32>
    %cst_8 = arith.constant 1.250000e+00 : f32
    %11 = vector.broadcast %cst_8 : f32 to vector<8x128xf32>
    %12 = arith.mulf %7, %11 : vector<8x128xf32>
    %cst_9 = arith.constant 0.000000e+00 : f32
    %13 = vector.broadcast %cst_9 : f32 to vector<8x128xf32>
    %14 = arith.select %10, %12, %13 : vector<8x128xi1>, vector<8x128xf32>
    %c0_10 = arith.constant 0 : index
    %c0_11 = arith.constant 0 : index
    %15 = vector.load %arg4[%c0_10, %c0_11] : memref<128x128xf32, #tpu.memory_space<vmem>>, vector<128x128xf32>
    %cst_12 = arith.constant dense<0.000000e+00> : vector<8x128xf32>
    %16 = tpu.matmul %14, %15, %cst_12 {dimension_numbers = #tpu.dot_dimension_numbers<[1], [0], [0], [1], [0, 0, 1, 1], [], []>} : vector<8x128xf32>, vector<128x128xf32>, vector<8x128xf32> -> vector<8x128xf32>
    %c0_13 = arith.constant 0 : index
    %c0_14 = arith.constant 0 : index
    %17 = vector.load %arg5[%c0_13, %c0_14] : memref<1x128xf32, #tpu.memory_space<vmem>>, vector<1x128xf32>
    %18 = vector.broadcast %17 : vector<1x128xf32> to vector<8x128xf32>
    %19 = arith.addf %16, %18 : vector<8x128xf32>
    %c0_15 = arith.constant 0 : index
    %c0_16 = arith.constant 0 : index
    %20 = vector.load %arg7[%c0_15, %c0_16] : memref<8x128xf32, #tpu.memory_space<vmem>>, vector<8x128xf32>
    tpu.vector_store %arg7[%c0_15, %c0_16], %19 {strides = array<i32>} : memref<8x128xf32, #tpu.memory_space<vmem>>, vector<8x128xf32>,
    return
  }
  func.func @transform_0(%arg0: i32) -> (i32, i32) {
    %c0_i32 = arith.constant 0 : i32
    %c0_i32_0 = arith.constant 0 : i32
    return %arg0, %c0_i32 : i32, i32
  }
  func.func @transform_1(%arg0: i32) -> (i32, i32) {
    %c0_i32 = arith.constant 0 : i32
    %c0_i32_0 = arith.constant 0 : i32
    %c0_i32_1 = arith.constant 0 : i32
    return %c0_i32, %c0_i32_0 : i32, i32
  }
  func.func @transform_2(%arg0: i32) -> (i32, i32) {
    %c0_i32 = arith.constant 0 : i32
    %c0_i32_0 = arith.constant 0 : i32
    %c0_i32_1 = arith.constant 0 : i32
    return %c0_i32, %c0_i32_0 : i32, i32
  }
  func.func @transform_3(%arg0: i32) -> (i32, i32) {
    %c0_i32 = arith.constant 0 : i32
    %c0_i32_0 = arith.constant 0 : i32
    %c0_i32_1 = arith.constant 0 : i32
    return %c0_i32, %c0_i32_0 : i32, i32
  }
  func.func @transform_4(%arg0: i32) -> (i32, i32) {
    %c0_i32 = arith.constant 0 : i32
    %c0_i32_0 = arith.constant 0 : i32
    %c0_i32_1 = arith.constant 0 : i32
    return %c0_i32, %c0_i32_0 : i32, i32
  }
  func.func @transform_5(%arg0: i32) -> (i32, i32) {
    %c0_i32 = arith.constant 0 : i32
    %c0_i32_0 = arith.constant 0 : i32
    return %arg0, %c0_i32 : i32, i32
  }
  func.func @transform_6(%arg0: i32) -> (i32, i32) {
    %c0_i32 = arith.constant 0 : i32
    %c0_i32_0 = arith.constant 0 : i32
    return %arg0, %c0_i32 : i32, i32
  }
}

</mosaic_0001>

<bundles_post_ra>
// kernel: basic_classif_forward.1
= control target key start
LH: loop header
LB: loop body
LE: loop exit
PB: predicated region body
PF: predicated region fallthrough
CT: control target
= control target key end

     0   :  { %11 = vsyncpa [#allocation3], 0  ;;  %s861_s21 = smov [#allocation2]   ;;  %s1004_s0 = inlined_call_operand.vmem [shape: f32[8,784], index: 0, kind: input, shape index: {}]   ;;  %s1005_s1 = inlined_call_operand.hbm [shape: f32[784,128], index: 1, kind: input, shape index: {}]   ;;  %s1006_s2 = inlined_call_operand.vmem [shape: f32[1,128], index: 2, kind: input, shape index: {}]   ;;  %s1007_s3 = inlined_call_operand.vmem [shape: f32[128,128], index: 3, kind: input, shape index: {}]   ;;  %s1008_s4 = inlined_call_operand.vmem [shape: f32[1,128], index: 4, kind: input, shape index: {}]   ;;  %s1009_s5 = inlined_call_operand.vmem [shape: u32[8,128], index: 5, kind: input, shape index: {}]   ;;  %s1010_s6 = inlined_call_operand.vmem [shape: f32[8,128], index: 6, kind: output, shape index: {}]  }
   0x1   :  { %s19_s22 = sshll.u32 %s861_s21, 4  ;;  %s837_s25 = scalar_lea.hbm %s1005_s1, 12544  ;;  %s20_s22 = int_to_ptr.vmem [resolvable:$true] %s19_s22 }
   0x2   :  { %p838_p0 = scmp.ne.s32.totalorder %s1005_s1, %s837_s25  ;;  %p841_p1 = scmp.lt.u32.totalorder %s837_s25, %s1005_s1 }
   0x4   :  { %p843_p2 = pnand %p841_p1, %p838_p0 }
   0x6   :  { %846 = shalt.err (!%p843_p2)
}
   0x7   :  { %s847_s30 = scalar_lea.vmem %s20_s22, 12544  ;;  %p852_p4 = scmp.lt.s32.totalorder %s20_s22, %s20_s22 }
   0x8   :  { %p848_p3 = scmp.ne.s32.totalorder %s20_s22, %s847_s30  ;;  %p853_p5 = scmp.lt.s32.totalorder %s847_s30, %s847_s30 }
   0xa   :  { %p854_p6 = por %p853_p5, %p852_p4 }
   0xc   :  { %p855_p7 = pnand %p854_p6, %p848_p3 }
   0xe   :  { %858 = shalt.err (!%p855_p7)
}
   0xf   :  { %s862_s7 = smov 128   ;;  %s863_s8 = smov 8  }
  0x10   :  { %25 = dma.hbm_to_vmem [thread:$0]  %s1005_s1, 12544, %s20_s22, [#allocation3], %s862_s7, %s862_s7, %s863_s8  }
  0x11   :  { %859 = dma.done.wait [#allocation3], 12544  }
  0x12   :  { %860 = vsyncadd [#allocation3], 4294954752  ;;  %v60_v0 = vld [vmem:[#allocation2 + $0x80] sm:$0xff]  ;;  %v61_v1 = vld [vmem:[#allocation2 + $0x88] sm:$0xff]  ;;  %vm865_vm0 = vmmov 0   ;;  %vm149_vm1 = vcmask 130048  }
  0x13   :  { %v44_v2 = vld [vmem:[#allocation2] sm:$0xff]  ;;  %v708_v3 = vpack.c.bf16 %v61_v1, %v60_v0  ;;  %v45_v4 = vld [vmem:[#allocation2 + $0x8] sm:$0xff]  ;;  %v62_v11 = vld [vmem:[#allocation2 + $0x90] sm:$0xff] }
  0x14   :  { %v92_v5 = vld [vmem:[#allocation2 + $0x180] sm:$0xff]  ;;  %v93_v6 = vld [vmem:[#allocation2 + $0x188] sm:$0xff]  ;;  %v710_v7 = vpack.c.bf16 %v45_v4, %v44_v2  ;;  %v63_v13 = vld [vmem:[#allocation2 + $0x98] sm:$0xff] }
  0x15   :  { %v740_v8 = vpack.c.bf16 %v93_v6, %v92_v5  ;;  %v76_v9 = vld [vmem:[#allocation2 + $0x100] sm:$0xff]  ;;  %v77_v10 = vld [vmem:[#allocation2 + $0x108] sm:$0xff]  ;;  %709 = vmatprep.subr.bf16.mxu0 %v708_v3  ;;  %v46_v14 = vld [vmem:[#allocation2 + $0x10] sm:$0xff]  ;;  %v712_v16 = vpack.c.bf16 %v63_v13, %v62_v11 }
  0x16   :  { %v742_v12 = vpack.c.bf16 %v77_v10, %v76_v9  ;;  %v47_v15 = vld [vmem:[#allocation2 + $0x18] sm:$0xff]  ;;  %711 = vmatpush3.bf16.msra.mxu0 %v710_v7  ;;  %v94_v18 = vld [vmem:[#allocation2 + $0x190] sm:$0xff]  ;;  %v64_v23 = vld [vmem:[#allocation2 + $0xa0] sm:$0xff] }
  0x17   :  { %741 = vmatprep.subr.bf16.mxu1 %v740_v8  ;;  %v714_v17 = vpack.c.bf16 %v47_v15, %v46_v14  ;;  %v95_v19 = vld [vmem:[#allocation2 + $0x198] sm:$0xff]  ;;  %v78_v20 = vld [vmem:[#allocation2 + $0x110] sm:$0xff]  ;;  %v65_v24 = vld [vmem:[#allocation2 + $0xa8] sm:$0xff]  ;;  %713 = vmatprep.subr.bf16.mxu0 %v712_v16 }
  0x18   :  { %743 = vmatpush3.bf16.msra.mxu1 %v742_v12  ;;  %v744_v21 = vpack.c.bf16 %v95_v19, %v94_v18  ;;  %v79_v22 = vld [vmem:[#allocation2 + $0x118] sm:$0xff]  ;;  %v716_v26 = vpack.c.bf16 %v65_v24, %v64_v23  ;;  %v48_v27 = vld [vmem:[#allocation2 + $0x20] sm:$0xff]  ;;  %v49_v28 = vld [vmem:[#allocation2 + $0x28] sm:$0xff] }
  0x19   :  { %v746_v25 = vpack.c.bf16 %v79_v22, %v78_v20  ;;  %v96_v29 = vld [vmem:[#allocation2 + $0x1a0] sm:$0xff]  ;;  %v97_v30 = vld [vmem:[#allocation2 + $0x1a8] sm:$0xff]  ;;  %v718_v33 = vpack.c.bf16 %v49_v28, %v48_v27  ;;  %v66_v35 = vld [vmem:[#allocation2 + $0xb0] sm:$0xff] }
  0x1a   :  { %745 = vmatprep.subr.bf16.mxu1 %v744_v21  ;;  %v80_v31 = vld [vmem:[#allocation2 + $0x120] sm:$0xff]  ;;  %v81_v32 = vld [vmem:[#allocation2 + $0x128] sm:$0xff]  ;;  %715 = vmatpush3.bf16.msra.mxu0 %v714_v17  ;;  %v748_v34 = vpack.c.bf16 %v97_v30, %v96_v29  ;;  %v67_v36 = vld [vmem:[#allocation2 + $0xb8] sm:$0xff] }
  0x1b   :  { %v50_v37 = vld [vmem:[#allocation2 + $0x30] sm:$0xff]  ;;  %717 = vmatprep.subr.bf16.mxu0 %v716_v26  ;;  %v750_v38 = vpack.c.bf16 %v81_v32, %v80_v31  ;;  %v720_v39 = vpack.c.bf16 %v67_v36, %v66_v35  ;;  %v51_v40 = vld [vmem:[#allocation2 + $0x38] sm:$0xff]  ;;  %v68_v46 = vld [vmem:[#allocation2 + $0xc0] sm:$0xff] }
  0x1c   :  { %747 = vmatpush3.bf16.msra.mxu1 %v746_v25  ;;  %v98_v41 = vld [vmem:[#allocation2 + $0x1b0] sm:$0xff]  ;;  %v99_v42 = vld [vmem:[#allocation2 + $0x1b8] sm:$0xff]  ;;  %v69_v47 = vld [vmem:[#allocation2 + $0xc8] sm:$0xff]  ;;  %v722_v48 = vpack.c.bf16 %v51_v40, %v50_v37 }
  0x1d   :  { %749 = vmatprep.subr.bf16.mxu1 %v748_v34  ;;  %v752_v43 = vpack.c.bf16 %v99_v42, %v98_v41  ;;  %v82_v44 = vld [vmem:[#allocation2 + $0x130] sm:$0xff]  ;;  %v83_v45 = vld [vmem:[#allocation2 + $0x138] sm:$0xff]  ;;  %v100_v49 = vld [vmem:[#allocation2 + $0x1c0] sm:$0xff]  ;;  %v724_v52 = vpack.c.bf16 %v69_v47, %v68_v46 }
  0x1e   :  { %719 = vmatpush3.bf16.msra.mxu0 %v718_v33  ;;  %v101_v50 = vld [vmem:[#allocation2 + $0x1c8] sm:$0xff]  ;;  %v754_v51 = vpack.c.bf16 %v83_v45, %v82_v44  ;;  %v52_v53 = vld [vmem:[#allocation2 + $0x40] sm:$0xff]  ;;  %v70_v58 = vld [vmem:[#allocation2 + $0xd0] sm:$0xff] }
  0x1f   :  { %721 = vmatprep.subr.bf16.mxu0 %v720_v39  ;;  %v53_v54 = vld [vmem:[#allocation2 + $0x48] sm:$0xff]  ;;  %v84_v55 = vld [vmem:[#allocation2 + $0x140] sm:$0xff]  ;;  %v756_v56 = vpack.c.bf16 %v101_v50, %v100_v49  ;;  %v71_v59 = vld [vmem:[#allocation2 + $0xd8] sm:$0xff]  ;;  %v864_v50 = vmov 0.0|0.0  }
  0x20   :  { %751 = vmatpush3.bf16.msra.mxu1 %v750_v38  ;;  %v85_v57 = vld [vmem:[#allocation2 + $0x148] sm:$0xff]  ;;  %v102_v60 = vld [vmem:[#allocation2 + $0x1d0] sm:$0xff]  ;;  %v103_v61 = vld [vmem:[#allocation2 + $0x1d8] sm:$0xff]  ;;  %v726_v62 = vpack.c.bf16 %v53_v54, %v52_v53  ;;  %v728_v0 = vpack.c.bf16 %v71_v59, %v70_v58 }
  0x21   :  { %753 = vmatprep.subr.bf16.mxu1 %v752_v43  ;;  %v758_v63 = vpack.c.bf16 %v85_v57, %v84_v55  ;;  %v54_v1 = vld [vmem:[#allocation2 + $0x50] sm:$0xff]  ;;  %v55_v2 = vld [vmem:[#allocation2 + $0x58] sm:$0xff]  ;;  %v760_v4 = vpack.c.bf16 %v103_v61, %v102_v60  ;;  %v72_v6 = vld [vmem:[#allocation2 + $0xe0] sm:$0xff]  ;;  %v866_v60 = vmov 0.0  }
  0x22   :  { %723 = vmatpush3.bf16.msra.mxu0 %v722_v48  ;;  %v86_v3 = vld [vmem:[#allocation2 + $0x150] sm:$0xff]  ;;  %v87_v5 = vld [vmem:[#allocation2 + $0x158] sm:$0xff]  ;;  %v73_v7 = vld [vmem:[#allocation2 + $0xe8] sm:$0xff]  ;;  %v730_v10 = vpack.c.bf16 %v55_v2, %v54_v1 }
  0x23   :  { %725 = vmatprep.subr.bf16.mxu0 %v724_v52  ;;  %v104_v8 = vld [vmem:[#allocation2 + $0x1e0] sm:$0xff]  ;;  %v105_v9 = vld [vmem:[#allocation2 + $0x1e8] sm:$0xff]  ;;  %v762_v13 = vpack.c.bf16 %v87_v5, %v86_v3  ;;  %v732_v14 = vpack.c.bf16 %v73_v7, %v72_v6  ;;  %v74_v19 = vld [vmem:[#allocation2 + $0xf0] sm:$0xff] }
  0x24   :  { %755 = vmatpush3.bf16.msra.mxu1 %v754_v51  ;;  %v56_v11 = vld [vmem:[#allocation2 + $0x60] sm:$0xff]  ;;  %v38_v12 = vld [vmem:[%s1004_s0 + $0x8] sm:$0xff]  ;;  %v764_v18 = vpack.c.bf16 %v105_v9, %v104_v8  ;;  %v75_v20 = vld [vmem:[#allocation2 + $0xf8] sm:$0xff] }
  0x25   :  { %757 = vmatprep.subr.bf16.mxu1 %v756_v56  ;;  %v57_v15 = vld [vmem:[#allocation2 + $0x68] sm:$0xff]  ;;  %v88_v16 = vld [vmem:[#allocation2 + $0x160] sm:$0xff]  ;;  %217 = vmatprep.mubr.f32.mxu0 %v38_v12  ;;  %v40_v21 = vld [vmem:[%s1004_s0 + $0x18] sm:$0xff]  ;;  %v736_v26 = vpack.c.bf16 %v75_v20, %v74_v19 }
  0x26   :  { %727 = vmatpush3.bf16.msra.mxu0 %v726_v62  ;;  %v89_v17 = vld [vmem:[#allocation2 + $0x168] sm:$0xff]  ;;  %v106_v22 = vld [vmem:[#allocation2 + $0x1f0] sm:$0xff]  ;;  %v107_v23 = vld [vmem:[#allocation2 + $0x1f8] sm:$0xff]  ;;  %287 = vmatprep.mubr.f32.mxu1 %v40_v21  ;;  %v734_v24 = vpack.c.bf16 %v57_v15, %v56_v11 }
  0x27   :  { %729 = vmatprep.subr.bf16.mxu0 %v728_v0  ;;  %v766_v25 = vpack.c.bf16 %v89_v17, %v88_v16  ;;  %v58_v27 = vld [vmem:[#allocation2 + $0x70] sm:$0xff]  ;;  %v59_v28 = vld [vmem:[#allocation2 + $0x78] sm:$0xff]  ;;  %v768_v30 = vpack.c.bf16 %v107_v23, %v106_v22  ;;  %v124_v32 = vld [vmem:[#allocation2 + $0x280] sm:$0xff] }
  0x28   :  { %759 = vmatpush3.bf16.msra.mxu1 %v758_v63  ;;  %v90_v29 = vld [vmem:[#allocation2 + $0x170] sm:$0xff]  ;;  %v91_v31 = vld [vmem:[#allocation2 + $0x178] sm:$0xff]  ;;  %v125_v33 = vld [vmem:[#allocation2 + $0x288] sm:$0xff]  ;;  %v738_v34 = vpack.c.bf16 %v59_v28, %v58_v27 }
  0x29   :  { %761 = vmatprep.subr.bf16.mxu1 %v760_v4  ;;  %v770_v35 = vpack.c.bf16 %v91_v31, %v90_v29  ;;  %v772_v36 = vpack.c.bf16 %v125_v33, %v124_v32  ;;  %v108_v37 = vld [vmem:[#allocation2 + $0x200] sm:$0xff]  ;;  %v109_v38 = vld [vmem:[#allocation2 + $0x208] sm:$0xff]  ;;  %v126_v39 = vld [vmem:[#allocation2 + $0x290] sm:$0xff] }
  0x2a   :  { %731 = vmatpush3.bf16.msra.mxu0 %v730_v10  ;;  %v127_v40 = vld [vmem:[#allocation2 + $0x298] sm:$0xff]  ;;  %v37_v41 = vld [vmem:[%s1004_s0] sm:$0xff]  ;;  %v774_v42 = vpack.c.bf16 %v109_v38, %v108_v37  ;;  %v39_v43 = vld [vmem:[%s1004_s0 + $0x10] sm:$0xff] }
  0x2b   :  { %733 = vmatprep.subr.bf16.mxu0 %v732_v14  ;;  %v110_v44 = vld [vmem:[#allocation2 + $0x210] sm:$0xff]  ;;  %v776_v45 = vpack.c.bf16 %v127_v40, %v126_v39  ;;  %v111_v46 = vld [vmem:[#allocation2 + $0x218] sm:$0xff]  ;;  %v128_v47 = vld [vmem:[#allocation2 + $0x2a0] sm:$0xff] }
  0x2c   :  { %763 = vmatpush3.bf16.msra.mxu1 %v762_v13  ;;  %v129_v48 = vld [vmem:[#allocation2 + $0x2a8] sm:$0xff]  ;;  %v140_v51 = vld [vmem:[#allocation2 + $0x300] sm:$0xff]  ;;  %v778_v54 = vpack.c.bf16 %v111_v46, %v110_v44  ;;  %v130_v58 = vld [vmem:[#allocation2 + $0x2b0] sm:$0xff] }
  0x2d   :  { %765 = vmatprep.subr.bf16.mxu1 %v764_v18  ;;  %v42_v49 = vld [vmem:[%s1004_s0 + $0x28] sm:$0xff]  ;;  %v780_v55 = vpack.c.bf16 %v129_v48, %v128_v47  ;;  %v112_v56 = vld [vmem:[#allocation2 + $0x220] sm:$0xff]  ;;  %v131_v59 = vld [vmem:[#allocation2 + $0x2b8] sm:$0xff] }
  0x2e   :  { %735 = vmatpush3.bf16.msra.mxu0 %v734_v24  ;;  %v141_v52 = vld [vmem:[#allocation2 + $0x308] sm:$0xff]  ;;  %v43_v61 = vld [vmem:[%s1004_s0 + $0x30] sm:$0xff]  ;;  %v784_v63 = vpack.c.bf16 %v131_v59, %v130_v58  ;;  %v115_v1 = vld [vmem:[#allocation2 + $0x238] sm:$0xff] }
  0x2f   :  { %737 = vmatprep.subr.bf16.mxu0 %v736_v26  ;;  %v805_v53 = vpack.c.bf16 %v141_v52, %v140_v51  ;;  %v113_v57 = vld [vmem:[#allocation2 + $0x228] sm:$0xff]  ;;  %v114_v0 = vld [vmem:[#allocation2 + $0x230] sm:$0xff]  ;;  %v132_v2 = vld [vmem:[#allocation2 + $0x2c0] sm:$0xff] }
  0x30   :  { %767 = vmatpush3.bf16.msra.mxu1 %v766_v25  ;;  %v782_v62 = vpack.c.bf16 %v113_v57, %v112_v56  ;;  %v133_v3 = vld [vmem:[#allocation2 + $0x2c8] sm:$0xff]  ;;  %v786_v4 = vpack.c.bf16 %v115_v1, %v114_v0  ;;  %v116_v6 = vld [vmem:[#allocation2 + $0x240] sm:$0xff]  ;;  %v134_v8 = vld [vmem:[#allocation2 + $0x2d0] sm:$0xff] }
  0x31   :  { %769 = vmatprep.subr.bf16.mxu1 %v768_v30  ;;  %v788_v5 = vpack.c.bf16 %v133_v3, %v132_v2  ;;  %v117_v7 = vld [vmem:[#allocation2 + $0x248] sm:$0xff]  ;;  %v135_v9 = vld [vmem:[#allocation2 + $0x2d8] sm:$0xff]  ;;  %v118_v12 = vld [vmem:[#allocation2 + $0x250] sm:$0xff] }
  0x32   :  { %739 = vmatpush3.bf16.msra.mxu0 %v738_v34  ;;  %v790_v10 = vpack.c.bf16 %v117_v7, %v116_v6  ;;  %v792_v11 = vpack.c.bf16 %v135_v9, %v134_v8  ;;  %v119_v13 = vld [vmem:[#allocation2 + $0x258] sm:$0xff]  ;;  %v136_v14 = vld [vmem:[#allocation2 + $0x2e0] sm:$0xff]  ;;  %v137_v15 = vld [vmem:[#allocation2 + $0x2e8] sm:$0xff] }
  0x33   :  { %773 = vmatprep.subr.bf16.mxu0 %v772_v36  ;;  %v794_v16 = vpack.c.bf16 %v119_v13, %v118_v12  ;;  %v796_v17 = vpack.c.bf16 %v137_v15, %v136_v14  ;;  %v120_v18 = vld [vmem:[#allocation2 + $0x260] sm:$0xff]  ;;  %v121_v19 = vld [vmem:[#allocation2 + $0x268] sm:$0xff]  ;;  %v138_v20 = vld [vmem:[#allocation2 + $0x2f0] sm:$0xff] }
  0x34   :  { %771 = vmatpush3.bf16.msra.mxu1 %v770_v35  ;;  %v139_v21 = vld [vmem:[#allocation2 + $0x2f8] sm:$0xff]  ;;  %v798_v22 = vpack.c.bf16 %v121_v19, %v120_v18  ;;  %v122_v24 = vld [vmem:[#allocation2 + $0x270] sm:$0xff]  ;;  %v41_v27 = vld [vmem:[%s1004_s0 + $0x20] sm:$0xff] }
  0x35   :  { %804 = vmatprep.subr.bf16.mxu1 %v864_v50  ;;  %218 = vmatmul.mubr.f32.vlgmr.msra.gmra.mrb[0].mxu0 %v37_v41  ;;  %v800_v23 = vpack.c.bf16 %v139_v21, %v138_v20  ;;  %v123_v25 = vld [vmem:[#allocation2 + $0x278] sm:$0xff]  ;;  %v438_v28 = vld [vmem:[%s1007_s3] sm:$0xff]  ;;  %v439_v29 = vld [vmem:[%s1007_s3 + $0x8] sm:$0xff] }
  0x36   :  { %775 = vmatpush3.bf16.msra.mxu0 %v774_v42  ;;  %357 = vmatprep.mubr.f32.mxu0 %v42_v49  ;;  %v802_v26 = vpack.c.bf16 %v123_v25, %v122_v24  ;;  %v440_v30 = vld [vmem:[%s1007_s3 + $0x10] sm:$0xff]  ;;  %v808_v31 = vpack.c.bf16 %v439_v29, %v438_v28  ;;  %v441_v32 = vld [vmem:[%s1007_s3 + $0x18] sm:$0xff]  ;;  %v442_v34 = vld [vmem:[%s1007_s3 + $0x20] sm:$0xff] }
  0x37   :  { %288 = vmatmul.mubr.f32.vlgmr.msra.gmra.mrb[0].mxu1 %v39_v43  ;;  %777 = vmatprep.subr.bf16.mxu0 %v776_v45  ;;  %v811_v33 = vpack.c.bf16 %v441_v32, %v440_v30  ;;  %v443_v35 = vld [vmem:[%s1007_s3 + $0x28] sm:$0xff]  ;;  %v444_v37 = vld [vmem:[%s1007_s3 + $0x30] sm:$0xff]  ;;  %v445_v38 = vld [vmem:[%s1007_s3 + $0x38] sm:$0xff] }
  0x38   :  { %806 = vmatpush3.bf16.msra.mxu1 %v805_v53  ;;  %670 = vmatprep.mubr.msk.f32.mxu1 %vm865_vm0, %v866_v60  ;;  %v814_v36 = vpack.c.bf16 %v443_v35, %v442_v34  ;;  %v817_v39 = vpack.c.bf16 %v445_v38, %v444_v37  ;;  %v446_v40 = vld [vmem:[%s1007_s3 + $0x40] sm:$0xff]  ;;  %v447_v41 = vld [vmem:[%s1007_s3 + $0x48] sm:$0xff]  ;;  %v448_v43 = vld [vmem:[%s1007_s3 + $0x50] sm:$0xff] }
  0x39   :  { %807 = vmatprep.subr.bf16.mxu1 %v864_v50  ;;  %v820_v42 = vpack.c.bf16 %v447_v41, %v446_v40  ;;  %v449_v44 = vld [vmem:[%s1007_s3 + $0x58] sm:$0xff]  ;;  %v450_v46 = vld [vmem:[%s1007_s3 + $0x60] sm:$0xff]  ;;  %v451_v47 = vld [vmem:[%s1007_s3 + $0x68] sm:$0xff] }
  0x3a   :  { %779 = vmatpush3.bf16.msra.mxu0 %v778_v54  ;;  %v823_v45 = vpack.c.bf16 %v449_v44, %v448_v43  ;;  %v826_v48 = vpack.c.bf16 %v451_v47, %v450_v46  ;;  %v452_v49 = vld [vmem:[%s1007_s3 + $0x70] sm:$0xff]  ;;  %v453_v51 = vld [vmem:[%s1007_s3 + $0x78] sm:$0xff]  ;;  %v537_v54 = vld [vmem:[%s1006_s2] ss:$0 sm:$0xff] }
  0x3b   :  { %781 = vmatprep.subr.bf16.mxu0 %v780_v55  ;;  %671 = vmatmul.mubr.msk.f32.vlgmr.msra.gmra.mrb[2].mxu1 %vm149_vm1, %v43_v61  ;;  %v829_v52 = vpack.c.bf16 %v453_v51, %v452_v49  ;;  %v539_v7 = vld [vmem:[%s1008_s4] ss:$0 sm:$0xff] }
  0x3c   :  { %705 = vmatprep.mubr.msk.f32.mxu1 %vm865_vm0, %v866_v60  ;;  %809 = vmatpush3.bf16.msra.mxu1 %v808_v31 }
  0x3d   :  { %810 = vmatprep.subr.bf16.mxu1 %v864_v50 }
  0x3e   :  { %783 = vmatpush3.bf16.msra.mxu0 %v782_v62 }
  0x3f   :  { %785 = vmatprep.subr.bf16.mxu0 %v784_v63 }
  0x40   :  { %812 = vmatpush3.bf16.msra.mxu1 %v811_v33 }
  0x41   :  { %813 = vmatprep.subr.bf16.mxu1 %v864_v50 }
  0x42   :  { %787 = vmatpush3.bf16.msra.mxu0 %v786_v4  ;;  %v434_v4 = vld [vmem:[%s1009_s5] sm:$0xff] }
  0x43   :  { %789 = vmatprep.subr.bf16.mxu0 %v788_v5  ;;  %vm435_vm2 = vcmp.ge.u32.totalorder %v434_v4, 858993459 }
  0x44   :  { %815 = vmatpush3.bf16.msra.mxu1 %v814_v36 }
  0x45   :  { %816 = vmatprep.subr.bf16.mxu1 %v864_v50 }
  0x46   :  { %791 = vmatpush3.bf16.msra.mxu0 %v790_v10 }
  0x47   :  { %793 = vmatprep.subr.bf16.mxu0 %v792_v11 }
  0x48   :  { %818 = vmatpush3.bf16.msra.mxu1 %v817_v39 }
  0x49   :  { %819 = vmatprep.subr.bf16.mxu1 %v864_v50 }
  0x4a   :  { %795 = vmatpush3.bf16.msra.mxu0 %v794_v16 }
  0x4b   :  { %797 = vmatprep.subr.bf16.mxu0 %v796_v17 }
  0x4c   :  { %821 = vmatpush3.bf16.msra.mxu1 %v820_v42 }
  0x4d   :  { %822 = vmatprep.subr.bf16.mxu1 %v864_v50 }
  0x4e   :  { %799 = vmatpush3.bf16.msra.mxu0 %v798_v22 }
  0x4f   :  { %801 = vmatprep.subr.bf16.mxu0 %v800_v23 }
  0x50   :  { %824 = vmatpush3.bf16.msra.mxu1 %v823_v45 }
  0x51   :  { %825 = vmatprep.subr.bf16.mxu1 %v864_v50 }
  0x52   :  { %803 = vmatpush3.bf16.msra.mxu0 %v802_v26 }
  0x54   :  { %827 = vmatpush3.bf16.msra.mxu1 %v826_v48 }
  0x55   :  { %358 = vmatmul.mubr.f32.vlgmr.msra.gmra.mrb[2].mxu0 %v41_v27  ;;  %828 = vmatprep.subr.bf16.mxu1 %v864_v50 }
  0x58   :  { %830 = vmatpush3.bf16.msra.mxu1 %v829_v52 }
 0x108   :  { %v573_v53 = vpop.f32.mrb[0].mxu0 }
 0x109   :  { %v574_v55 = vpop.f32.mrb[1].mxu0 }
 0x10a   :  { %v608_v56 = vpop.f32.mrb[0].mxu1  ;;  %v575_v57 = vadd.f32 %v574_v55, %v573_v53 }
 0x10b   :  { %v609_v58 = vpop.f32.mrb[1].mxu1 }
 0x10c   :  { %v610_v50 = vadd.f32 %v609_v58, %v608_v56  ;;  %v220_v59 = vadd.f32 %v575_v57, %v537_v54 }
 0x10e   :  { %v290_v60 = vadd.f32 %v610_v50, %v220_v59  ;;  %v429_v61 = vpop.f32.mrb[2].mxu1 }
 0x10f   :  { %v672_v62 = vpop.f32.mrb[3].mxu1 }
 0x128   :  { %v643_v63 = vpop.f32.mrb[2].mxu0 }
 0x129   :  { %v644_v0 = vpop.f32.mrb[3].mxu0 }
 0x12a   :  { %v645_v1 = vadd.f32 %v644_v0, %v643_v63 }
 0x12c   :  { %v360_v2 = vadd.f32 %v645_v1, %v290_v60 }
 0x12e   :  { %v430_v3 = vadd.f32 %v429_v61, %v360_v2 }
 0x130   :  { %v433_v5 = vmax.f32 %v430_v3, 0.0 }
 0x132   :  { %v436_v6 = vmul.f32 1.25, %v433_v5 }
 0x134   :  { %706 = vmatmul.mubr.msk.f32.vlgmr.msra.gmra.mrb[4].mxu1 %vm435_vm2, %v436_v6 }
 0x207   :  { %v527_v8 = vpop.f32.mrb[4].mxu1 }
 0x208   :  { %v528_v9 = vadd.f32 %v539_v7, %v527_v8  ;;  %v707_v10 = vpop.f32.mrb[5].mxu1 }
 0x20a   :  { %531 = vst [vmem:[%s1010_s6] sm:$0xff] %v528_v9 }
 0x20b   :  { %536 = vsyncpa [#allocation3], 1 }

</bundles_post_ra>
